<compile_context>
chip_gen: v7x
topology: tpu7x:2x2x1
jax: 0.10.0
libtpu: 0.0.40
codegen_flags: <defaults>
</compile_context>

<pallas_src>
import functools

import jax
import jax.numpy as jnp
from jax.experimental import pallas as pl
from jax.experimental.pallas import tpu as pltpu

POLYVORE_CATEGORIES = ['all-body', 'bottoms', 'tops', 'outerwear', 'bags', 'shoes',
                       'accessories', 'scarves', 'hats', 'sunglasses', 'jewellery',
                       'unknown']
UNKNOWN_CATEGORY = 'unknown'

# Matches the PyTorch __init__: cfg.category (already containing 'unknown')
# gets another 'unknown' appended -> 13 embedding rows.  list.index() returns
# the FIRST occurrence (row 11) for unknowns, exactly like the torch module.
CATEGORY = POLYVORE_CATEGORIES + [UNKNOWN_CATEGORY]
N_CATEGORY = len(CATEGORY)          # 13
N_CAT_PAD = 16                      # padded #table columns in transposed layout
D_CATEGORY = 16
N_SUBSPACE = 5

_EPS = 1e-12                        # F.normalize default eps


def _round_up(x, m):
    return (x + m - 1) // m * m


def to_emb_idx(category_list):
    """str categories -> embedding indices (same semantics as the torch module)."""
    idxs = []
    for c in category_list:
        c = c if c in CATEGORY else UNKNOWN_CATEGORY
        idxs.append(CATEGORY.index(c))
    return jnp.asarray(idxs, dtype=jnp.int32)


def _csa_weight_kernel(idx_ref, tableT_ref, w1_ref, b1_ref, w2_ref, b2_ref,
                       out_ref):
    # idx_ref   : (2, tile_b) int32   row 0 = category idx, row 1 = target idx
    # tableT_ref: (16, 16)    f32     normalized table, transposed, zero-padded
    # w1_ref    : (16, 16)    f32     torch layout [out, in]
    # b1_ref    : (16, 1)     f32
    # w2_ref    : (5, 16)     f32     torch layout [out, in]
    # b2_ref    : (5, 1)      f32
    # out_ref   : (5, tile_b) f32
    tile_b = idx_ref.shape[1]
    n_cat_pad = tableT_ref.shape[1]

    # Fused embedding gather: (onehot_x + onehot_t) built batch-on-lanes, then
    # one MXU matmul against the pre-normalized transposed table.
    cat_iota = jax.lax.broadcasted_iota(jnp.int32, (n_cat_pad, tile_b), 0)
    oh_sum = ((cat_iota == idx_ref[0:1, :]).astype(jnp.float32)
              + (cat_iota == idx_ref[1:2, :]).astype(jnp.float32))
    z = jnp.dot(tableT_ref[...], oh_sum,
                preferred_element_type=jnp.float32)                 # (16, tile_b)

    # Linear -> ReLU -> Linear, all in transposed (feature-on-sublane) layout.
    h = jnp.dot(w1_ref[...], z, preferred_element_type=jnp.float32) + b1_ref[...]
    h = jnp.maximum(h, 0.0)                                          # (16, tile_b)
    logits = (jnp.dot(w2_ref[...], h, preferred_element_type=jnp.float32)
              + b2_ref[...])                                         # (5, tile_b)

    # Softmax over the subspace axis (now a cheap 5-row sublane reduce).
    # Exact reciprocal (EUP-assisted Newton) so rows sum to 1 within 1e-5.
    m = jnp.max(logits, axis=0, keepdims=True)
    e = jnp.exp(logits - m)
    inv = pl.reciprocal(jnp.sum(e, axis=0, keepdims=True))
    out_ref[...] = (e * inv).astype(out_ref.dtype)


@functools.partial(jax.jit, static_argnames=("tile_b",))
def csa_subspace_weights(emb_table, emb_idxs, target_emb_idxs,
                         w1, b1, w2, b2, *, tile_b=8192):
    """emb_idxs / target_emb_idxs: [B] int32; returns [B, N_SUBSPACE] f32.

    Weights are in torch-native layout: w1 [16,16], b1 [16], w2 [5,16], b2 [5].
    """
    B = emb_idxs.shape[0]
    S = w2.shape[0]                       # n_subspace
    D = emb_table.shape[1]                # d_category

    # Lane-dense batch tiling: multiple of 128; cap so the grid has >= 2 steps
    # whenever possible (lets v7x shard batch tiles across its 2 TensorCores).
    tb = max(128, min(tile_b, _round_up(pl.cdiv(B, 2), 128)))
    tb = _round_up(tb, 128)
    Bp = _round_up(B, tb)
    pad = Bp - B

    # Pre-normalize the table once (per-row, same eps clamp as F.normalize),
    # transpose to feature-on-sublane, zero-pad columns to N_CAT_PAD.
    norms = jnp.sqrt(jnp.sum(emb_table * emb_table, axis=-1, keepdims=True))
    table_n = emb_table / jnp.maximum(norms, _EPS)
    tableT = jnp.pad(table_n.T.astype(jnp.float32),
                     ((0, 0), (0, N_CAT_PAD - emb_table.shape[0])))   # (16, 16)

    b1c = b1.reshape(-1, 1).astype(jnp.float32)                        # (16, 1)
    b2c = b2.reshape(-1, 1).astype(jnp.float32)                        # (5, 1)

    # Pack both index streams into one lane-dense (2, Bp) int32 array.
    idx_pair = jnp.stack([
        jnp.pad(emb_idxs.astype(jnp.int32), (0, pad)),
        jnp.pad(target_emb_idxs.astype(jnp.int32), (0, pad)),
    ], axis=0)                                                         # (2, Bp)

    grid = (Bp // tb,)
    const = lambda shape: pl.BlockSpec(shape, lambda i: (0, 0))        # resident

    out = pl.pallas_call(
        _csa_weight_kernel,
        out_shape=jax.ShapeDtypeStruct((S, Bp), jnp.float32),
        grid=grid,
        in_specs=[
            pl.BlockSpec((2, tb), lambda i: (0, i)),   # packed indices (streamed)
            const(tableT.shape),                       # normalized table^T
            const(w1.shape),                           # W1 [out, in]
            const(b1c.shape),                          # b1 [out, 1]
            const(w2.shape),                           # W2 [out, in]
            const(b2c.shape),                          # b2 [out, 1]
        ],
        out_specs=pl.BlockSpec((S, tb), lambda i: (0, i)),
        compiler_params=pltpu.CompilerParams(
            dimension_semantics=("parallel",)),
    )(idx_pair, tableT, w1.astype(jnp.float32), b1c,
      w2.astype(jnp.float32), b2c)

    # Back to the torch-facing (B, n_subspace) layout.
    return out[:, :B].T


def init_params(key):
    """Deterministic synthetic parameters matching the module's shapes."""
    k_emb, k_w1, k_b1, k_w2, k_b2 = jax.random.split(key, 5)
    # nn.Embedding(13, 16): N(0, 1)
    emb_table = jax.random.normal(k_emb, (N_CATEGORY, D_CATEGORY), jnp.float32)
    # nn.Linear(16, 16) and nn.Linear(16, 5), torch-native [out, in] layout.
    lim1 = 1.0 / jnp.sqrt(D_CATEGORY)
    w1 = jax.random.uniform(k_w1, (D_CATEGORY, D_CATEGORY), jnp.float32, -lim1, lim1)
    b1 = jax.random.uniform(k_b1, (D_CATEGORY,), jnp.float32, -lim1, lim1)
    w2 = jax.random.uniform(k_w2, (N_SUBSPACE, D_CATEGORY), jnp.float32, -lim1, lim1)
    b2 = jax.random.uniform(k_b2, (N_SUBSPACE,), jnp.float32, -lim1, lim1)
    return emb_table, w1, b1, w2, b2


def forward(category, target_category, params, *, tile_b=8192):
    emb_table, w1, b1, w2, b2 = params
    emb_idxs = to_emb_idx(category)
    target_emb_idxs = to_emb_idx(target_category)
    return csa_subspace_weights(emb_table, emb_idxs, target_emb_idxs,
                                w1, b1, w2, b2, tile_b=tile_b)


def _reference(emb_table, emb_idxs, target_emb_idxs, w1, b1, w2, b2):
    """Pure-JAX reference of the torch forward (for correctness checking)."""
    def norm(v):
        return v / jnp.maximum(jnp.linalg.norm(v, axis=-1, keepdims=True), _EPS)
    x = norm(jnp.take(emb_table, emb_idxs, axis=0))
    t = norm(jnp.take(emb_table, target_emb_idxs, axis=0))
    z = x + t
    h = jnp.maximum(z @ w1.T + b1, 0.0)
    return jax.nn.softmax(h @ w2.T + b2, axis=-1)


if __name__ == "__main__":
    params = init_params(jax.random.PRNGKey(0))
    emb_table, w1, b1, w2, b2 = params

    # --- small string-driven batch (B = 8), matches the torch API -----------
    category = ['tops', 'bottoms', 'shoes', 'hats',
                'not-a-real-category', 'bags', 'jewellery', 'scarves']
    target_category = ['outerwear', 'tops', 'tops', 'sunglasses',
                       'bottoms', 'accessories', 'all-body', 'mystery']

    w = forward(category, target_category, params)
    w = jax.block_until_ready(w)
    assert w.shape == (8, N_SUBSPACE)
    assert bool(jnp.all(jnp.abs(jnp.sum(w, axis=-1) - 1.0) < 1e-5))

    ref = _reference(emb_table, to_emb_idx(category), to_emb_idx(target_category),
                     w1, b1, w2, b2)
    assert bool(jnp.all(jnp.abs(w - ref) < 1e-5))

    # --- larger random-index batch: exercises padding + a 2-step grid -------
    kb = jax.random.PRNGKey(1)
    k1, k2 = jax.random.split(kb)
    B2 = 300
    idxs = jax.random.randint(k1, (B2,), 0, N_CATEGORY, dtype=jnp.int32)
    tidxs = jax.random.randint(k2, (B2,), 0, N_CATEGORY, dtype=jnp.int32)
    w_big = csa_subspace_weights(emb_table, idxs, tidxs, w1, b1, w2, b2)
    w_big = jax.block_until_ready(w_big)
    ref2 = _reference(emb_table, idxs, tidxs, w1, b1, w2, b2)
    assert w_big.shape == (B2, N_SUBSPACE)
    assert bool(jnp.all(jnp.abs(w_big - ref2) < 1e-5))
    assert bool(jnp.all(jnp.abs(jnp.sum(w_big, axis=-1) - 1.0) < 1e-5))

    print("KERNEL_OK")
</pallas_src>

<mosaic_0001>
module attributes {stable_mosaic.version = 11 : i64} {
  func.func @_csa_weight_kernel(%arg0: i32, %arg1: memref<2x128xi32, #tpu.memory_space<vmem>>, %arg2: memref<16x16xf32, #tpu.memory_space<vmem>>, %arg3: memref<16x16xf32, #tpu.memory_space<vmem>>, %arg4: memref<16x1xf32, #tpu.memory_space<vmem>>, %arg5: memref<5x16xf32, #tpu.memory_space<vmem>>, %arg6: memref<5x1xf32, #tpu.memory_space<vmem>>, %arg7: memref<5x128xf32, #tpu.memory_space<vmem>>) attributes {dimension_semantics = [#tpu.dimension_semantics<parallel>], iteration_bounds = array<i64: 1>, scalar_prefetch = 0 : i64, scratch_operands = 0 : i64, tpu.core_type = #tpu.core_type<tc>, window_params = [{transform_indices = @transform_0, window_bounds = array<i64: 2, 128>}, {pipeline_mode = #tpu.pipeline_mode<synchronous>, transform_indices = @transform_1, window_bounds = array<i64: 16, 16>}, {pipeline_mode = #tpu.pipeline_mode<synchronous>, transform_indices = @transform_2, window_bounds = array<i64: 16, 16>}, {pipeline_mode = #tpu.pipeline_mode<synchronous>, transform_indices = @transform_3, window_bounds = array<i64: 16, 1>}, {pipeline_mode = #tpu.pipeline_mode<synchronous>, transform_indices = @transform_4, window_bounds = array<i64: 5, 16>}, {pipeline_mode = #tpu.pipeline_mode<synchronous>, transform_indices = @transform_5, window_bounds = array<i64: 5, 1>}, {transform_indices = @transform_6, window_bounds = array<i64: 5, 128>}]} {
    %0 = tpu.iota {dimensions = array<i32: 0>} : vector<16x128xi32>
    %c0 = arith.constant 0 : index
    %c0_0 = arith.constant 0 : index
    %1 = vector.load %arg1[%c0, %c0_0] : memref<2x128xi32, #tpu.memory_space<vmem>>, vector<1x128xi32>
    %2 = vector.broadcast %1 : vector<1x128xi32> to vector<16x128xi32>
    %3 = arith.cmpi eq, %0, %2 : vector<16x128xi32>
    %4 = arith.extui %3 : vector<16x128xi1> to vector<16x128xi32>
    %5 = arith.sitofp %4 : vector<16x128xi32> to vector<16x128xf32>
    %c1 = arith.constant 1 : index
    %c0_1 = arith.constant 0 : index
    %6 = vector.load %arg1[%c1, %c0_1] : memref<2x128xi32, #tpu.memory_space<vmem>>, vector<1x128xi32>
    %7 = vector.broadcast %6 : vector<1x128xi32> to vector<16x128xi32>
    %8 = arith.cmpi eq, %0, %7 : vector<16x128xi32>
    %9 = arith.extui %8 : vector<16x128xi1> to vector<16x128xi32>
    %10 = arith.sitofp %9 : vector<16x128xi32> to vector<16x128xf32>
    %11 = arith.addf %5, %10 : vector<16x128xf32>
    %c0_2 = arith.constant 0 : index
    %c0_3 = arith.constant 0 : index
    %12 = vector.load %arg2[%c0_2, %c0_3] : memref<16x16xf32, #tpu.memory_space<vmem>>, vector<16x16xf32>
    %cst = arith.constant dense<0.000000e+00> : vector<16x128xf32>
    %13 = tpu.matmul %12, %11, %cst {dimension_numbers = #tpu.dot_dimension_numbers<[1], [0], [0], [1], [0, 0, 1, 1], [], []>} : vector<16x16xf32>, vector<16x128xf32>, vector<16x128xf32> -> vector<16x128xf32>
    %c0_4 = arith.constant 0 : index
    %c0_5 = arith.constant 0 : index
    %14 = vector.load %arg3[%c0_4, %c0_5] : memref<16x16xf32, #tpu.memory_space<vmem>>, vector<16x16xf32>
    %cst_6 = arith.constant dense<0.000000e+00> : vector<16x128xf32>
    %15 = tpu.matmul %14, %13, %cst_6 {dimension_numbers = #tpu.dot_dimension_numbers<[1], [0], [0], [1], [0, 0, 1, 1], [], []>} : vector<16x16xf32>, vector<16x128xf32>, vector<16x128xf32> -> vector<16x128xf32>
    %c0_7 = arith.constant 0 : index
    %c0_8 = arith.constant 0 : index
    %16 = vector.load %arg4[%c0_7, %c0_8] : memref<16x1xf32, #tpu.memory_space<vmem>>, vector<16x1xf32>
    %17 = vector.broadcast %16 : vector<16x1xf32> to vector<16x128xf32>
    %18 = arith.addf %15, %17 : vector<16x128xf32>
    %cst_9 = arith.constant 0.000000e+00 : f32
    %19 = vector.broadcast %cst_9 : f32 to vector<16x128xf32>
    %20 = arith.maximumf %18, %19 : vector<16x128xf32>
    %c0_10 = arith.constant 0 : index
    %c0_11 = arith.constant 0 : index
    %21 = vector.load %arg5[%c0_10, %c0_11] : memref<5x16xf32, #tpu.memory_space<vmem>>, vector<5x16xf32>
    %cst_12 = arith.constant dense<0.000000e+00> : vector<5x128xf32>
    %22 = tpu.matmul %21, %20, %cst_12 {dimension_numbers = #tpu.dot_dimension_numbers<[1], [0], [0], [1], [0, 0, 1, 1], [], []>} : vector<5x16xf32>, vector<16x128xf32>, vector<5x128xf32> -> vector<5x128xf32>
    %c0_13 = arith.constant 0 : index
    %c0_14 = arith.constant 0 : index
    %23 = vector.load %arg6[%c0_13, %c0_14] : memref<5x1xf32, #tpu.memory_space<vmem>>, vector<5x1xf32>
    %24 = vector.broadcast %23 : vector<5x1xf32> to vector<5x128xf32>
    %25 = arith.addf %22, %24 : vector<5x128xf32>
    %cst_15 = arith.constant dense<0xFF800000> : vector<128xf32>
    %26 = vector.multi_reduction <maximumf>, %25, %cst_15 [0] : vector<5x128xf32> to vector<128xf32>
    %27 = vector.shape_cast %26 : vector<128xf32> to vector<1x128xf32>
    %28 = vector.broadcast %27 : vector<1x128xf32> to vector<5x128xf32>
    %29 = arith.subf %25, %28 : vector<5x128xf32>
    %30 = math.exp %29 : vector<5x128xf32>
    %cst_16 = arith.constant dense<0.000000e+00> : vector<128xf32>
    %31 = vector.multi_reduction <add>, %30, %cst_16 [0] : vector<5x128xf32> to vector<128xf32>
    %32 = vector.shape_cast %31 : vector<128xf32> to vector<1x128xf32>
    %33 = tpu.reciprocal %32 : vector<1x128xf32> -> vector<1x128xf32>
    %34 = vector.broadcast %33 : vector<1x128xf32> to vector<5x128xf32>
    %35 = arith.mulf %30, %34 : vector<5x128xf32>
    %c0_17 = arith.constant 0 : index
    %c0_18 = arith.constant 0 : index
    %36 = vector.load %arg7[%c0_17, %c0_18] : memref<5x128xf32, #tpu.memory_space<vmem>>, vector<5x128xf32>
    tpu.vector_store %arg7[%c0_17, %c0_18], %35 {strides = array<i32>} : memref<5x128xf32, #tpu.memory_space<vmem>>, vector<5x128xf32>,
    return
  }
  func.func @transform_0(%arg0: i32) -> (i32, i32) {
    %c0_i32 = arith.constant 0 : i32
    %c0_i32_0 = arith.constant 0 : i32
    return %c0_i32, %arg0 : i32, i32
  }
  func.func @transform_1(%arg0: i32) -> (i32, i32) {
    %c0_i32 = arith.constant 0 : i32
    %c0_i32_0 = arith.constant 0 : i32
    %c0_i32_1 = arith.constant 0 : i32
    return %c0_i32, %c0_i32_0 : i32, i32
  }
  func.func @transform_2(%arg0: i32) -> (i32, i32) {
    %c0_i32 = arith.constant 0 : i32
    %c0_i32_0 = arith.constant 0 : i32
    %c0_i32_1 = arith.constant 0 : i32
    return %c0_i32, %c0_i32_0 : i32, i32
  }
  func.func @transform_3(%arg0: i32) -> (i32, i32) {
    %c0_i32 = arith.constant 0 : i32
    %c0_i32_0 = arith.constant 0 : i32
    %c0_i32_1 = arith.constant 0 : i32
    return %c0_i32, %c0_i32_0 : i32, i32
  }
  func.func @transform_4(%arg0: i32) -> (i32, i32) {
    %c0_i32 = arith.constant 0 : i32
    %c0_i32_0 = arith.constant 0 : i32
    %c0_i32_1 = arith.constant 0 : i32
    return %c0_i32, %c0_i32_0 : i32, i32
  }
  func.func @transform_5(%arg0: i32) -> (i32, i32) {
    %c0_i32 = arith.constant 0 : i32
    %c0_i32_0 = arith.constant 0 : i32
    %c0_i32_1 = arith.constant 0 : i32
    return %c0_i32, %c0_i32_0 : i32, i32
  }
  func.func @transform_6(%arg0: i32) -> (i32, i32) {
    %c0_i32 = arith.constant 0 : i32
    %c0_i32_0 = arith.constant 0 : i32
    return %c0_i32, %arg0 : i32, i32
  }
}

</mosaic_0001>

<bundles_post_ra>
// kernel: csa_subspace_weights.1
= control target key start
LH: loop header
LB: loop body
LE: loop exit
PB: predicated region body
PF: predicated region fallthrough
CT: control target
= control target key end

     0   :  { %v23_v0 = vlaneseq  ;;  %vm52_vm0 = vcmask 130048   ;;  %v400_v6 = vmov 0.0   ;;  %v401_v16 = vmov 0   ;;  %s477_s0 = inlined_call_operand.vmem [shape: s32[2,128], index: 0, kind: input, shape index: {}]   ;;  %s478_s1 = inlined_call_operand.vmem [shape: f32[16,16], index: 1, kind: input, shape index: {}]   ;;  %s479_s2 = inlined_call_operand.vmem [shape: f32[16,16], index: 2, kind: input, shape index: {}]   ;;  %s480_s3 = inlined_call_operand.vmem [shape: f32[16,1], index: 3, kind: input, shape index: {}]   ;;  %s481_s5 = inlined_call_operand.vmem [shape: f32[5,1], index: 5, kind: input, shape index: {}]   ;;  %s482_s4 = inlined_call_operand.vmem [shape: f32[5,16], index: 4, kind: input, shape index: {}]   ;;  %s483_s6 = inlined_call_operand.vmem [shape: f32[5,128], index: 6, kind: output, shape index: {}]  }
   0x1   :  { %v336_v1 = vld [vmem:[%s477_s0] ss:$0 sm:$0xff]  ;;  %v339_v2 = vld [vmem:[%s477_s0 + $0x1] ss:$0 sm:$0xff]  ;;  %v51_v14 = vld [vmem:[%s478_s1 + $0x8] sm:$0xff]  ;;  %394 = vset.pattern.permute.xlu0 %v401_v16  ;;  %395 = vset.pattern.permute.xlu1 %v401_v16  ;;  %v402_v23 = vmov 0.0|0.0  }
   0x2   :  { %v50_v3 = vld [vmem:[%s478_s1] sm:$0xff]  ;;  %v24_v4 = vshrl.u32 %v23_v0, 7  ;;  %v137_v18 = vld [vmem:[%s480_s3 + $0x8] sm:$0xff]  ;;  %vm403_vm5 = vmmov 0   ;;  %vm311_vm6 = vcmask 1044480  }
   0x3   :  { %362 = vmatprep.mubr.msk.f32.mxu0 %vm52_vm0, %v50_v3  ;;  %v134_v15 = vld [vmem:[%s479_s2] sm:$0xff]  ;;  %v135_v22 = vld [vmem:[%s479_s2 + $0x8] sm:$0xff] }
   0x4   :  { %v25_v5 = vadd.s32 8, %v24_v4  ;;  %vm31_vm1 = vcmp.eq.s32.totalorder %v24_v4, %v336_v1  ;;  %vm42_vm2 = vcmp.eq.s32.totalorder %v24_v4, %v339_v2  ;;  %369 = vmatprep.mubr.msk.f32.mxu1 %vm52_vm0, %v134_v15  ;;  %v136_v17 = vld [vmem:[%s480_s3] sm:$0xff] }
   0x5   :  { %v337_v7 = vsel %vm31_vm1, 1.0, %v400_v6  ;;  %v340_v8 = vsel %vm42_vm2, 1.0, %v400_v6  ;;  %140 = vperm.xlu0 %394, %v136_v17   ;;  %v232_v24 = vld [vmem:[%s481_s5] sm:$0x1f] }
   0x6   :  { %vm32_vm3 = vcmp.eq.s32.totalorder %v25_v5, %v336_v1  ;;  %vm43_vm4 = vcmp.eq.s32.totalorder %v25_v5, %v339_v2  ;;  %v48_v9 = vadd.f32 %v340_v8, %v337_v7  ;;  %235 = vperm.xlu1 %395, %v232_v24   ;;  %v231_v34 = vld [vmem:[%s482_s4] sm:$0x1f] }
   0x7   :  { %v338_v10 = vsel %vm32_vm3, 1.0, %v400_v6  ;;  %v341_v11 = vsel %vm43_vm4, 1.0, %v400_v6 }
   0x8   :  { %v49_v12 = vadd.f32 %v341_v11, %v338_v10 }
   0x9   :  { %145 = vperm.xlu0 %394, %v137_v18  }
   0xa   :  { %v379_v13 = vpack.c.bf16 %v49_v12, %v48_v9 }
   0xc   :  { %380 = vmatprep.subr.bf16.mxu0 %v379_v13 }
   0xd   :  { %382 = vmatpush3.bf16.msra.mxu0 %v379_v13 }
   0xe   :  { %387 = vmatprep.subr.bf16.mxu0 %v402_v23 }
  0x10   :  { %363 = vmatmul.mubr.msk.f32.vlgmr.msra.gmra.mrb[0].mxu0 %vm52_vm0, %v51_v14 }
  0x11   :  { %376 = vmatprep.mubr.msk.f32.mxu0 %vm403_vm5, %v400_v6 }
  0x84   :  { %v141_v25 = vpop.permute.xlu0 %140 }
  0x85   :  { %v236_v35 = vpop.permute.xlu1 %235 }
  0x88   :  { %v146_v26 = vpop.permute.xlu0 %145 }
  0xe3   :  { %v364_v19 = vpop.f32.mrb[0].mxu0 }
  0xe4   :  { %v125_v20 = vpop.f32.mrb[1].mxu0 }
  0xe5   :  { %v383_v21 = vpack.c.bf16 %v364_v19, %v125_v20 }
  0xe7   :  { %384 = vmatprep.subr.bf16.mxu1 %v383_v21 }
  0xe8   :  { %386 = vmatpush3.bf16.msra.mxu1 %v383_v21 }
  0xeb   :  { %370 = vmatmul.mubr.msk.f32.vlgmr.msra.gmra.mrb[0].mxu1 %vm52_vm0, %v135_v22 }
 0x1be   :  { %v371_v27 = vpop.f32.mrb[0].mxu1 }
 0x1bf   :  { %v226_v28 = vadd.f32 %v371_v27, %v146_v26  ;;  %v220_v29 = vpop.f32.mrb[1].mxu1 }
 0x1c0   :  { %v221_v30 = vadd.f32 %v220_v29, %v141_v25 }
 0x1c1   :  { %v230_v31 = vmax.f32 %v226_v28, 0.0 }
 0x1c2   :  { %v229_v32 = vmax.f32 %v221_v30, 0.0 }
 0x1c4   :  { %v388_v33 = vpack.c.bf16 %v230_v31, %v229_v32 }
 0x1c6   :  { %389 = vmatpush3.bf16.msra.mxu0 %v388_v33 }
 0x1c9   :  { %377 = vmatmul.mubr.msk.f32.vlgmr.msra.gmra.mrb[2].mxu0 %vm52_vm0, %v231_v34 }
 0x29c   :  { %v307_v36 = vpop.f32.mrb[2].mxu0 }
 0x29d   :  { %v308_v37 = vadd.f32 %v307_v36, %v236_v35  ;;  %v378_v38 = vpop.f32.mrb[3].mxu0 }
 0x29f   :  { %v312_v39 = vsel %vm311_vm6, %v308_v37, -inf }
 0x2a0   :  { %v313_v40 = vrot.slane %v312_v39, 4 }
 0x2a2   :  { %v314_v41 = vmax.f32 %v312_v39, %v313_v40 }
 0x2a4   :  { %v315_v42 = vrot.slane %v314_v41, 2 }
 0x2a6   :  { %v316_v43 = vmax.f32 %v314_v41, %v315_v42 }
 0x2a8   :  { %v317_v44 = vrot.slane %v316_v43, 1 }
 0x2aa   :  { %v318_v45 = vmax.f32 %v316_v43, %v317_v44 }
 0x2ac   :  { %v319_v46 = vsub.f32 %v308_v37, %v318_v45 }
 0x2ae   :  { %v320_v47 = vmul.f32 1.442695, %v319_v46 }
 0x2b0   :  { %396 = vpow2.f32 %v320_v47 }
 0x2ba   :  { %v397_v48 = vpop.eup %396 }
 0x2bb   :  { %v322_v49 = vsel %vm311_vm6, %v397_v48, 0.0 }
 0x2bc   :  { %v323_v50 = vrot.slane %v322_v49, 4 }
 0x2be   :  { %v324_v51 = vadd.f32 %v323_v50, %v322_v49 }
 0x2c0   :  { %v325_v52 = vrot.slane %v324_v51, 2 }
 0x2c2   :  { %v326_v53 = vadd.f32 %v325_v52, %v324_v51 }
 0x2c4   :  { %v327_v54 = vrot.slane %v326_v53, 1 }
 0x2c6   :  { %v328_v55 = vadd.f32 %v327_v54, %v326_v53 }
 0x2c8   :  { %398 = vrcp.f32 %v328_v55 }
 0x2d2   :  { %v399_v56 = vpop.eup %398 }
 0x2d3   :  { %v330_v57 = vmul.f32 %v399_v56, %v397_v48 }
 0x2d5   :  { %331 = vst [vmem:[%s483_s6] sm:$0x1f] %v330_v57 }

</bundles_post_ra>
